<compile_context>
chip_gen: v6e
topology: v6e:2x2x1
jax: 0.10.0
libtpu: 0.0.40
codegen_flags: <defaults>
</compile_context>

<pallas_src>
import functools

import jax
import jax.numpy as jnp
from jax.experimental import pallas as pl
from jax.experimental.pallas import tpu as pltpu

SUBVEC_LENGTH = 3   # Conv1d in_channels (Subvec_lengh in the PyTorch script)
CONV_OUT = 64       # Conv1d out_channels
FC1_OUT = 50
FC2_OUT = 1

K_IN = 8            # padded conv contraction dim: 3 inputs + 1 ones row + 4 zero rows
H0 = CONV_OUT + 1   # 65 = 64 conv channels + 1 ones channel (carries fc1 bias into the fc1 dot)
H1 = FC1_OUT + 1    # 51 = 50 fc1 outputs + 1 ones channel (carries fc2 bias)

LANES = 128
TILE_N_DEFAULT = 16384          # lane tile over batch (multiple of 128)
VMEM_LIMIT_BYTES = 48 << 20     # raise scoped VMEM; stays under v7x's 64 MiB physical per TC
MIN_GRID_STEPS = 2              # give both v7x TensorCores work when N allows it


def _round_up(n, m):
    return ((n + m - 1) // m) * m


def forecast_kernel(x_ref, wc_ref, w1_ref, w2_ref, o_ref):
    # x_ref : (8, TILE_N)   rows 0..2 = x[:, :, -1].T, row 3 = ones, rows 4..7 = zeros
    # wc_ref: (65, 8)       augmented conv matrix (conv weight | conv bias | 0s; ones-channel row)
    # w1_ref: (51, 65)      augmented fc1 matrix (fc1 weight | fc1 bias; ones-channel row)
    # w2_ref: (51, 1)       augmented fc2 column (fc2 weight ; fc2 bias)
    # o_ref : (1, TILE_N)
    x = x_ref[...]

    # --- conv1d(k=1) at the last time step, bias folded: one small MXU matmul ---
    h0 = jnp.dot(wc_ref[...], x.astype(wc_ref.dtype),
                 preferred_element_type=jnp.float32)          # (65, TILE_N)
    h0 = jnp.maximum(h0, 0.0)                                 # ReLU; ones channel stays 1

    # --- fc1 (64 -> 50), bias folded via the ones channel: MXU matmul ---
    h1 = jnp.dot(w1_ref[...], h0.astype(w1_ref.dtype),
                 preferred_element_type=jnp.float32)          # (51, TILE_N)
    h1 = jnp.maximum(h1, 0.0)                                 # ReLU; ones channel stays 1

    # --- fc2 (50 -> 1) incl. bias: multiply + sublane reduce (XLU), not a ~1%-utilized matmul ---
    o_ref[...] = jnp.sum(w2_ref[...] * h1, axis=0, keepdims=True)   # (1, TILE_N)


def prepare_params(params, compute_dtype=jnp.float32):
    """Build augmented, bias-folded weight matrices (layout glue hoisted out of the forward).

    compute_dtype=jnp.bfloat16 puts the two MXU contractions in bf16 (f32 accumulation kept
    via preferred_element_type); fc2's column stays f32 since it feeds the VPU/XLU epilogue.
    """
    wc = params["conv_w"].reshape(CONV_OUT, SUBVEC_LENGTH).astype(jnp.float32)   # (64, 3)
    bc = params["conv_b"].reshape(CONV_OUT).astype(jnp.float32)                  # (64,)
    w1 = params["fc1_w"].astype(jnp.float32)                                     # (50, 64)
    b1 = params["fc1_b"].reshape(FC1_OUT).astype(jnp.float32)                    # (50,)
    w2 = params["fc2_w"].astype(jnp.float32)                                     # (1, 50)
    b2 = params["fc2_b"].reshape(1, 1).astype(jnp.float32)                       # (1, 1)

    # Augmented conv matrix (65, 8): rows 0..63 = [wc | bc | 0 0 0 0], row 64 = ones channel.
    wc_aug = jnp.zeros((H0, K_IN), jnp.float32)
    wc_aug = wc_aug.at[:CONV_OUT, :SUBVEC_LENGTH].set(wc)
    wc_aug = wc_aug.at[:CONV_OUT, SUBVEC_LENGTH].set(bc)
    wc_aug = wc_aug.at[CONV_OUT, SUBVEC_LENGTH].set(1.0)      # ReLU(1) = 1

    # Augmented fc1 matrix (51, 65): rows 0..49 = [w1 | b1], row 50 = ones channel.
    w1_aug = jnp.zeros((H1, H0), jnp.float32)
    w1_aug = w1_aug.at[:FC1_OUT, :CONV_OUT].set(w1)
    w1_aug = w1_aug.at[:FC1_OUT, CONV_OUT].set(b1)
    w1_aug = w1_aug.at[FC1_OUT, CONV_OUT].set(1.0)            # ReLU(1) = 1

    # Augmented fc2 column (51, 1) = [w2.T ; b2].
    w2_aug = jnp.concatenate([w2.T, b2], axis=0)

    return {
        "wc": wc_aug.astype(compute_dtype),
        "w1": w1_aug.astype(compute_dtype),
        "w2": w2_aug,                         # stays f32 (VPU multiply + XLU reduce epilogue)
    }


def _choose_tile(n, tile_n_max):
    # Aim for >= MIN_GRID_STEPS grid steps (so v7x's 2 TCs both get work), but never below
    # one 128-lane tile and never above tile_n_max.  Harmless on v5e/v6e (1 TC).
    target = _round_up(pl.cdiv(n, MIN_GRID_STEPS), LANES)
    return max(LANES, min(int(tile_n_max), target))


@functools.partial(jax.jit, static_argnames=("tile_n_max",))
def cnn_forecastnet_forward(x, kp, tile_n_max=TILE_N_DEFAULT):
    """x: (N, 3, L) float32 in PyTorch NCL layout. kp: prepare_params output. Returns (N, 1)."""
    N = x.shape[0]

    tile_n = _choose_tile(N, tile_n_max)
    n_pad = pl.cdiv(N, tile_n) * tile_n

    # Fused (under jit) slice + transpose + pad: batch goes to the lane axis; row 3 is the
    # ones row that carries the conv bias into the MXU contraction.
    # TODO(synk): if the data producer can emit x_last already as (3, N), drop this HBM pass.
    x_last = x[:, :, -1].astype(jnp.float32).T                # (3, N)
    x_aug = jnp.zeros((K_IN, n_pad), jnp.float32)
    x_aug = x_aug.at[:SUBVEC_LENGTH, :N].set(x_last)
    x_aug = x_aug.at[SUBVEC_LENGTH, :].set(1.0)

    grid = (n_pad // tile_n,)
    const = lambda i: (0, 0)   # weights stay resident across grid steps

    y = pl.pallas_call(
        forecast_kernel,
        out_shape=jax.ShapeDtypeStruct((1, n_pad), jnp.float32),
        grid=grid,
        in_specs=[
            pl.BlockSpec((K_IN, tile_n), lambda i: (0, i)),   # x tile (batch on lanes)
            pl.BlockSpec((H0, K_IN), const),                  # augmented conv matrix
            pl.BlockSpec((H1, H0), const),                    # augmented fc1 matrix
            pl.BlockSpec((H1, 1), const),                     # augmented fc2 column
        ],
        out_specs=pl.BlockSpec((1, tile_n), lambda i: (0, i)),  # lane-dense output tile
        compiler_params=pltpu.CompilerParams(
            dimension_semantics=("parallel",),                  # shard batch tiles (v7x 2 TCs)
            vmem_limit_bytes=VMEM_LIMIT_BYTES,
        ),
    )(x_aug, kp["wc"], kp["w1"], kp["w2"])

    return y[:, :N].T                                           # (N, 1)


def _reference_forward(x, p):
    # Pure-JAX replica of the PyTorch forward (full conv over L, then slice).
    y = jnp.einsum("ock,ncl->nol", p["conv_w"], x) + p["conv_b"][None, :, None]
    y = jnp.maximum(y, 0.0)
    h = y[:, :, -1]
    h = jnp.maximum(h @ p["fc1_w"].T + p["fc1_b"], 0.0)
    return h @ p["fc2_w"].T + p["fc2_b"]


if __name__ == "__main__":
    key = jax.random.PRNGKey(0)
    ks = jax.random.split(key, 8)

    # Deterministic synthetic parameters (same shapes as the PyTorch module's __init__).
    params = {
        "conv_w": 0.1 * jax.random.normal(ks[1], (CONV_OUT, SUBVEC_LENGTH, 1), jnp.float32),
        "conv_b": 0.1 * jax.random.normal(ks[2], (CONV_OUT,), jnp.float32),
        "fc1_w": 0.1 * jax.random.normal(ks[3], (FC1_OUT, CONV_OUT), jnp.float32),
        "fc1_b": 0.1 * jax.random.normal(ks[4], (FC1_OUT,), jnp.float32),
        "fc2_w": 0.1 * jax.random.normal(ks[5], (FC2_OUT, FC1_OUT), jnp.float32),
        "fc2_b": 0.1 * jax.random.normal(ks[6], (FC2_OUT,), jnp.float32),
    }
    kp = prepare_params(params)

    # Small case: single grid step, batch padded 8 -> 128 lanes.
    N, L = 8, 8
    x = jax.random.normal(ks[0], (N, SUBVEC_LENGTH, L), dtype=jnp.float32)
    out = cnn_forecastnet_forward(x, kp)
    jax.block_until_ready(out)
    ref = _reference_forward(x, params)
    assert out.shape == (N, FC2_OUT)
    assert jnp.allclose(out, ref, atol=1e-4, rtol=1e-4)

    # Multi-step grid case with a ragged batch (exercises padding, >=2 grid steps, residency).
    N2 = 300
    x2 = jax.random.normal(ks[7], (N2, SUBVEC_LENGTH, L), dtype=jnp.float32)
    out2 = cnn_forecastnet_forward(x2, kp, tile_n_max=128)   # 3 grid steps, last one padded
    jax.block_until_ready(out2)
    ref2 = _reference_forward(x2, params)
    assert out2.shape == (N2, FC2_OUT)
    assert jnp.allclose(out2, ref2, atol=1e-4, rtol=1e-4)

    # bf16 weights for the MXU contractions (v6e/v7x-friendly); f32 accumulation, looser tol.
    kp_bf16 = prepare_params(params, compute_dtype=jnp.bfloat16)
    out3 = cnn_forecastnet_forward(x2, kp_bf16)
    jax.block_until_ready(out3)
    assert out3.shape == (N2, FC2_OUT)
    assert jnp.allclose(out3, ref2, atol=2e-2, rtol=2e-2)

    print("KERNEL_OK")
</pallas_src>

<mosaic_0001>
module attributes {stable_mosaic.version = 11 : i64} {
  func.func @forecast_kernel(%arg0: i32, %arg1: memref<8x128xf32, #tpu.memory_space<vmem>>, %arg2: memref<65x8xf32, #tpu.memory_space<vmem>>, %arg3: memref<51x65xf32, #tpu.memory_space<vmem>>, %arg4: memref<51x1xf32, #tpu.memory_space<vmem>>, %arg5: memref<1x128xf32, #tpu.memory_space<vmem>>) attributes {dimension_semantics = [#tpu.dimension_semantics<parallel>], iteration_bounds = array<i64: 1>, scalar_prefetch = 0 : i64, scratch_operands = 0 : i64, tpu.core_type = #tpu.core_type<tc>, window_params = [{transform_indices = @transform_0, window_bounds = array<i64: 8, 128>}, {pipeline_mode = #tpu.pipeline_mode<synchronous>, transform_indices = @transform_1, window_bounds = array<i64: 65, 8>}, {pipeline_mode = #tpu.pipeline_mode<synchronous>, transform_indices = @transform_2, window_bounds = array<i64: 51, 65>}, {pipeline_mode = #tpu.pipeline_mode<synchronous>, transform_indices = @transform_3, window_bounds = array<i64: 51, 1>}, {transform_indices = @transform_4, window_bounds = array<i64: 1, 128>}]} {
    %c0 = arith.constant 0 : index
    %c0_0 = arith.constant 0 : index
    %0 = vector.load %arg1[%c0, %c0_0] : memref<8x128xf32, #tpu.memory_space<vmem>>, vector<8x128xf32>
    %c0_1 = arith.constant 0 : index
    %c0_2 = arith.constant 0 : index
    %1 = vector.load %arg2[%c0_1, %c0_2] : memref<65x8xf32, #tpu.memory_space<vmem>>, vector<65x8xf32>
    %cst = arith.constant dense<0.000000e+00> : vector<65x128xf32>
    %2 = tpu.matmul %1, %0, %cst {dimension_numbers = #tpu.dot_dimension_numbers<[1], [0], [0], [1], [0, 0, 1, 1], [], []>} : vector<65x8xf32>, vector<8x128xf32>, vector<65x128xf32> -> vector<65x128xf32>
    %cst_3 = arith.constant 0.000000e+00 : f32
    %3 = vector.broadcast %cst_3 : f32 to vector<65x128xf32>
    %4 = arith.maximumf %2, %3 : vector<65x128xf32>
    %c0_4 = arith.constant 0 : index
    %c0_5 = arith.constant 0 : index
    %5 = vector.load %arg3[%c0_4, %c0_5] : memref<51x65xf32, #tpu.memory_space<vmem>>, vector<51x65xf32>
    %cst_6 = arith.constant dense<0.000000e+00> : vector<51x128xf32>
    %6 = tpu.matmul %5, %4, %cst_6 {dimension_numbers = #tpu.dot_dimension_numbers<[1], [0], [0], [1], [0, 0, 1, 1], [], []>} : vector<51x65xf32>, vector<65x128xf32>, vector<51x128xf32> -> vector<51x128xf32>
    %cst_7 = arith.constant 0.000000e+00 : f32
    %7 = vector.broadcast %cst_7 : f32 to vector<51x128xf32>
    %8 = arith.maximumf %6, %7 : vector<51x128xf32>
    %c0_8 = arith.constant 0 : index
    %c0_9 = arith.constant 0 : index
    %9 = vector.load %arg4[%c0_8, %c0_9] : memref<51x1xf32, #tpu.memory_space<vmem>>, vector<51x1xf32>
    %10 = vector.broadcast %9 : vector<51x1xf32> to vector<51x128xf32>
    %11 = arith.mulf %10, %8 : vector<51x128xf32>
    %cst_10 = arith.constant dense<0.000000e+00> : vector<128xf32>
    %12 = vector.multi_reduction <add>, %11, %cst_10 [0] : vector<51x128xf32> to vector<128xf32>
    %13 = vector.shape_cast %12 : vector<128xf32> to vector<1x128xf32>
    %c0_11 = arith.constant 0 : index
    %c0_12 = arith.constant 0 : index
    %14 = vector.load %arg5[%c0_11, %c0_12] : memref<1x128xf32, #tpu.memory_space<vmem>>, vector<1x128xf32>
    tpu.vector_store %arg5[%c0_11, %c0_12], %13 {strides = array<i32>} : memref<1x128xf32, #tpu.memory_space<vmem>>, vector<1x128xf32>,
    return
  }
  func.func @transform_0(%arg0: i32) -> (i32, i32) {
    %c0_i32 = arith.constant 0 : i32
    %c0_i32_0 = arith.constant 0 : i32
    return %c0_i32, %arg0 : i32, i32
  }
  func.func @transform_1(%arg0: i32) -> (i32, i32) {
    %c0_i32 = arith.constant 0 : i32
    %c0_i32_0 = arith.constant 0 : i32
    %c0_i32_1 = arith.constant 0 : i32
    return %c0_i32, %c0_i32_0 : i32, i32
  }
  func.func @transform_2(%arg0: i32) -> (i32, i32) {
    %c0_i32 = arith.constant 0 : i32
    %c0_i32_0 = arith.constant 0 : i32
    %c0_i32_1 = arith.constant 0 : i32
    return %c0_i32, %c0_i32_0 : i32, i32
  }
  func.func @transform_3(%arg0: i32) -> (i32, i32) {
    %c0_i32 = arith.constant 0 : i32
    %c0_i32_0 = arith.constant 0 : i32
    %c0_i32_1 = arith.constant 0 : i32
    return %c0_i32, %c0_i32_0 : i32, i32
  }
  func.func @transform_4(%arg0: i32) -> (i32, i32) {
    %c0_i32 = arith.constant 0 : i32
    %c0_i32_0 = arith.constant 0 : i32
    return %c0_i32, %arg0 : i32, i32
  }
}

</mosaic_0001>

<bundles_post_ra>
// kernel: cnn_forecastnet_forward.1
= control target key start
LH: loop header
LB: loop body
LE: loop exit
PB: predicated region body
PF: predicated region fallthrough
CT: control target
= control target key end

     0   :  { %vm27_vm0 = vcmask 64512   ;;  %v516_v0 = vmov 0.0   ;;  %vm517_vm1 = vmmov 0   ;;  %v518_v11 = vmov 0   ;;  %s689_s0 = inlined_call_operand.vmem [shape: f32[8,128], index: 0, kind: input, shape index: {}]   ;;  %s690_s1 = inlined_call_operand.vmem [shape: f32[65,8], index: 1, kind: input, shape index: {}]   ;;  %s691_s3 = inlined_call_operand.vmem [shape: f32[51,1], index: 3, kind: input, shape index: {}]   ;;  %s692_s2 = inlined_call_operand.vmem [shape: f32[51,65], index: 2, kind: input, shape index: {}]   ;;  %s693_s4 = inlined_call_operand.vmem [shape: f32[1,128], index: 4, kind: output, shape index: {}]  }
   0x1   :  { %425 = vmatprep.subr.mxu0 %v516_v0  ;;  %v17_v1 = vld [vmem:[%s689_s0] sm:$0xff]  ;;  %427 = vmatprep.mubr.msk.f32.mxu0 %vm517_vm1, %v516_v0  ;;  %v19_v3 = vld [vmem:[%s690_s1 + $0x8] sm:$0xff]  ;;  %v20_v4 = vld [vmem:[%s690_s1 + $0x10] sm:$0xff]  ;;  %vm203_vm2 = vcmask 1040384   ;;  %vm181_vm3 = vcmask 531456   ;;  %vm368_vm4 = vcmask 1042432  }
   0x2   :  { %v18_v2 = vld [vmem:[%s690_s1] sm:$0xff]  ;;  %426 = vmatpush3.msra.mxu0 %v17_v1  ;;  %493 = vmatprep.subr.mxu1 %v516_v0  ;;  %v21_v5 = vld [vmem:[%s690_s1 + $0x18] sm:$0xff]  ;;  %v23_v7 = vld [vmem:[%s690_s1 + $0x28] sm:$0xff] }
   0x3   :  { %428 = vmatmul.mubr.msk.f32.vlgmr.msra.gmra.mxu0 %vm27_vm0, %v18_v2  ;;  %454 = vmatprep.subr.mxu0 %v516_v0  ;;  %v22_v6 = vld [vmem:[%s690_s1 + $0x20] sm:$0xff]  ;;  %v24_v8 = vld [vmem:[%s690_s1 + $0x30] sm:$0xff]  ;;  %v25_v9 = vld [vmem:[%s690_s1 + $0x38] sm:$0xff] }
   0x4   :  { %430 = vmatprep.mubr.msk.f32.mxu0 %vm517_vm1, %v516_v0  ;;  %475 = vmatprep.mubr.msk.f32.mxu1 %vm517_vm1, %v516_v0  ;;  %v26_v10 = vld [vmem:[%s690_s1 + $0x40] sm:$0x1]  ;;  %v316_v13 = vld [vmem:[%s691_s3 + $0x10] sm:$0xff]  ;;  %v315_v14 = vld [vmem:[%s691_s3 + $0x8] sm:$0xff] }
   0x5   :  { %514 = vset.pattern.permute.xlu0 %v518_v11  ;;  %v314_v12 = vld [vmem:[%s691_s3] sm:$0xff]  ;;  %515 = vset.pattern.permute.xlu1 %v518_v11  ;;  %v317_v15 = vld [vmem:[%s691_s3 + $0x18] sm:$0xff]  ;;  %v319_v17 = vld [vmem:[%s691_s3 + $0x28] sm:$0xff] }
   0x6   :  { %323 = vperm.xlu0 %514, %v314_v12   ;;  %333 = vperm.xlu1 %515, %v316_v13   ;;  %v318_v16 = vld [vmem:[%s691_s3 + $0x20] sm:$0xff]  ;;  %v320_v18 = vld [vmem:[%s691_s3 + $0x30] sm:$0x7]  ;;  %v175_v46 = vld [vmem:[%s692_s2 + $0x8] sm:$0xff] }
   0x7   :  { %431 = vmatmul.mubr.msk.f32.gmra.mxu0 %vm27_vm0, %v19_v3  ;;  %v174_v47 = vld [vmem:[%s692_s2] sm:$0xff]  ;;  %v176_v48 = vld [vmem:[%s692_s2 + $0x10] sm:$0xff]  ;;  %v177_v49 = vld [vmem:[%s692_s2 + $0x18] sm:$0xff] }
   0x8   :  { %433 = vmatprep.mubr.msk.f32.mxu0 %vm517_vm1, %v516_v0  ;;  %v178_v50 = vld [vmem:[%s692_s2 + $0x20] sm:$0xff]  ;;  %v179_v51 = vld [vmem:[%s692_s2 + $0x28] sm:$0xff]  ;;  %v180_v52 = vld [vmem:[%s692_s2 + $0x30] sm:$0x7] }
   0xa   :  { %328 = vperm.xlu0 %514, %v315_v14   ;;  %338 = vperm.xlu1 %515, %v317_v15  }
   0xb   :  { %434 = vmatmul.mubr.msk.f32.gmra.mxu0 %vm27_vm0, %v20_v4 }
   0xc   :  { %436 = vmatprep.mubr.msk.f32.mxu0 %vm517_vm1, %v516_v0 }
   0xe   :  { %343 = vperm.xlu0 %514, %v318_v16   ;;  %348 = vperm.xlu1 %515, %v319_v17  }
   0xf   :  { %437 = vmatmul.mubr.msk.f32.gmra.mxu0 %vm27_vm0, %v21_v5 }
  0x10   :  { %439 = vmatprep.mubr.msk.f32.mxu0 %vm517_vm1, %v516_v0 }
  0x12   :  { %353 = vperm.xlu0 %514, %v320_v18  }
  0x13   :  { %440 = vmatmul.mubr.msk.f32.gmra.mxu0 %vm27_vm0, %v22_v6 }
  0x14   :  { %442 = vmatprep.mubr.msk.f32.mxu0 %vm517_vm1, %v516_v0 }
  0x17   :  { %443 = vmatmul.mubr.msk.f32.gmra.mxu0 %vm27_vm0, %v23_v7 }
  0x18   :  { %445 = vmatprep.mubr.msk.f32.mxu0 %vm517_vm1, %v516_v0 }
  0x1b   :  { %446 = vmatmul.mubr.msk.f32.gmra.mxu0 %vm27_vm0, %v24_v8 }
  0x1c   :  { %448 = vmatprep.mubr.msk.f32.mxu0 %vm517_vm1, %v516_v0 }
  0x1f   :  { %449 = vmatmul.mubr.msk.f32.gmra.mxu0 %vm27_vm0, %v25_v9 }
  0x20   :  { %451 = vmatprep.mubr.msk.f32.mxu0 %vm517_vm1, %v516_v0 }
  0x23   :  { %452 = vmatmul.mubr.msk.f32.gmra.mxu0 %vm27_vm0, %v26_v10 }
  0x24   :  { %472 = vmatprep.mubr.msk.f32.mxu0 %vm517_vm1, %v516_v0 }
  0x81   :  { %v324_v57 = vpop.permute.xlu0 %323  ;;  %v334_v60 = vpop.permute.xlu1 %333 }
  0x85   :  { %v329_v1 = vpop.permute.xlu0 %328  ;;  %v339_v7 = vpop.permute.xlu1 %338 }
  0x89   :  { %v344_v12 = vpop.permute.xlu0 %343 }
  0xc3   :  { %v629_v19 = vpop.f32.mrf.mxu0 }
  0xc4   :  { %v165_v45 = vmax.f32 %v629_v19, 0.0  ;;  %v349_v19 = vpop.permute.xlu1 %348 }
  0xc5   :  { %v429_v20 = vpop.f32.mrf.mxu0 }
  0xc7   :  { %v126_v21 = vpop.f32.mrf.mxu0 }
  0xc8   :  { %v166_v44 = vmax.f32 %v126_v21, 0.0 }
  0xc9   :  { %v432_v22 = vpop.f32.mrf.mxu0 }
  0xcb   :  { %v131_v23 = vpop.f32.mrf.mxu0 }
  0xcc   :  { %v167_v43 = vmax.f32 %v131_v23, 0.0 }
  0xcd   :  { %v435_v24 = vpop.f32.mrf.mxu0 }
  0xce   :  { %v354_v24 = vpop.permute.xlu0 %353 }
  0xcf   :  { %v136_v25 = vpop.f32.mrf.mxu0 }
  0xd0   :  { %v168_v42 = vmax.f32 %v136_v25, 0.0 }
  0xd1   :  { %v438_v26 = vpop.f32.mrf.mxu0 }
  0xd3   :  { %v141_v27 = vpop.f32.mrf.mxu0 }
  0xd4   :  { %v169_v41 = vmax.f32 %v141_v27, 0.0 }
  0xd5   :  { %v441_v28 = vpop.f32.mrf.mxu0 }
  0xd7   :  { %v146_v29 = vpop.f32.mrf.mxu0 }
  0xd8   :  { %v170_v40 = vmax.f32 %v146_v29, 0.0 }
  0xd9   :  { %v444_v30 = vpop.f32.mrf.mxu0 }
  0xdb   :  { %v151_v31 = vpop.f32.mrf.mxu0 }
  0xdc   :  { %v171_v39 = vmax.f32 %v151_v31, 0.0 }
  0xdd   :  { %v447_v32 = vpop.f32.mrf.mxu0 }
  0xdf   :  { %v156_v33 = vpop.f32.mrf.mxu0 }
  0xe0   :  { %v172_v38 = vmax.f32 %v156_v33, 0.0 }
  0xe1   :  { %v450_v34 = vpop.f32.mrf.mxu0 }
  0xe3   :  { %v161_v35 = vpop.f32.mrf.mxu0 }
  0xe4   :  { %v173_v36 = vmax.f32 %v161_v35, 0.0 }
  0xe5   :  { %v453_v37 = vpop.f32.mrf.mxu0 }
  0xe6   :  { %455 = vmatpush3.msk.msra.mxu0 %vm203_vm2, %v173_v36  ;;  %502 = vmatpush3.msk.msra.mxu1 %vm203_vm2, %v173_v36 }
  0xe7   :  { %456 = vmatprep.subr.mxu0 %v516_v0  ;;  %494 = vmatprep.subr.mxu1 %v516_v0 }
  0xe8   :  { %457 = vmatpush3.msra.mxu0 %v172_v38  ;;  %503 = vmatpush3.msra.mxu1 %v172_v38 }
  0xe9   :  { %458 = vmatprep.subr.mxu0 %v516_v0  ;;  %495 = vmatprep.subr.mxu1 %v516_v0 }
  0xea   :  { %459 = vmatpush3.msra.mxu0 %v171_v39  ;;  %504 = vmatpush3.msra.mxu1 %v171_v39 }
  0xeb   :  { %460 = vmatprep.subr.mxu0 %v516_v0  ;;  %496 = vmatprep.subr.mxu1 %v516_v0 }
  0xec   :  { %461 = vmatpush3.msra.mxu0 %v170_v40  ;;  %505 = vmatpush3.msra.mxu1 %v170_v40 }
  0xed   :  { %462 = vmatprep.subr.mxu0 %v516_v0  ;;  %497 = vmatprep.subr.mxu1 %v516_v0 }
  0xee   :  { %463 = vmatpush3.msra.mxu0 %v169_v41  ;;  %506 = vmatpush3.msra.mxu1 %v169_v41 }
  0xef   :  { %464 = vmatprep.subr.mxu0 %v516_v0  ;;  %498 = vmatprep.subr.mxu1 %v516_v0 }
  0xf0   :  { %465 = vmatpush3.msra.mxu0 %v168_v42  ;;  %507 = vmatpush3.msra.mxu1 %v168_v42 }
  0xf1   :  { %466 = vmatprep.subr.mxu0 %v516_v0  ;;  %499 = vmatprep.subr.mxu1 %v516_v0 }
  0xf2   :  { %467 = vmatpush3.msra.mxu0 %v167_v43  ;;  %508 = vmatpush3.msra.mxu1 %v167_v43 }
  0xf3   :  { %468 = vmatprep.subr.mxu0 %v516_v0  ;;  %500 = vmatprep.subr.mxu1 %v516_v0 }
  0xf4   :  { %469 = vmatpush3.msra.mxu0 %v166_v44  ;;  %509 = vmatpush3.msra.mxu1 %v166_v44 }
  0xf5   :  { %470 = vmatprep.subr.mxu0 %v516_v0  ;;  %501 = vmatprep.subr.mxu1 %v516_v0 }
  0xf6   :  { %471 = vmatpush3.msra.mxu0 %v165_v45  ;;  %510 = vmatpush3.msra.mxu1 %v165_v45 }
  0xf7   :  { %476 = vmatmul.mubr.msk.f32.vlgmr.msra.gmra.mxu1 %vm181_vm3, %v175_v46  ;;  %473 = vmatmul.mubr.msk.f32.vlgmr.msra.gmra.mxu0 %vm181_vm3, %v174_v47 }
  0xf8   :  { %478 = vmatprep.mubr.msk.f32.mxu1 %vm517_vm1, %v516_v0 }
  0xfb   :  { %479 = vmatmul.mubr.msk.f32.gmra.mxu1 %vm181_vm3, %v176_v48 }
  0xfc   :  { %481 = vmatprep.mubr.msk.f32.mxu1 %vm517_vm1, %v516_v0 }
  0xff   :  { %482 = vmatmul.mubr.msk.f32.gmra.mxu1 %vm181_vm3, %v177_v49 }
 0x100   :  { %484 = vmatprep.mubr.msk.f32.mxu1 %vm517_vm1, %v516_v0 }
 0x103   :  { %485 = vmatmul.mubr.msk.f32.gmra.mxu1 %vm181_vm3, %v178_v50 }
 0x104   :  { %487 = vmatprep.mubr.msk.f32.mxu1 %vm517_vm1, %v516_v0 }
 0x107   :  { %488 = vmatmul.mubr.msk.f32.gmra.mxu1 %vm181_vm3, %v179_v51 }
 0x108   :  { %490 = vmatprep.mubr.msk.f32.mxu1 %vm517_vm1, %v516_v0 }
 0x10b   :  { %491 = vmatmul.mubr.msk.f32.gmra.mxu1 %vm181_vm3, %v180_v52 }
 0x1b7   :  { %v278_v53 = vpop.f32.mrf.mxu1  ;;  %v273_v54 = vpop.f32.mrf.mxu0 }
 0x1b8   :  { %v308_v61 = vmax.f32 %v278_v53, 0.0  ;;  %v307_v62 = vmax.f32 %v273_v54, 0.0 }
 0x1b9   :  { %v477_v55 = vpop.f32.mrf.mxu1  ;;  %v474_v56 = vpop.f32.mrf.mxu0 }
 0x1ba   :  { %v356_v3 = vmul.f32 %v324_v57, %v307_v62  ;;  %v357_v5 = vmul.f32 %v329_v1, %v308_v61 }
 0x1bb   :  { %v283_v58 = vpop.f32.mrf.mxu1 }
 0x1bc   :  { %v309_v2 = vmax.f32 %v283_v58, 0.0  ;;  %v363_v11 = vadd.f32 %v357_v5, %v356_v3 }
 0x1bd   :  { %v480_v59 = vpop.f32.mrf.mxu1 }
 0x1be   :  { %v358_v8 = vmul.f32 %v334_v60, %v309_v2 }
 0x1bf   :  { %v288_v63 = vpop.f32.mrf.mxu1 }
 0x1c0   :  { %v310_v4 = vmax.f32 %v288_v63, 0.0  ;;  %v364_v16 = vadd.f32 %v363_v11, %v358_v8 }
 0x1c1   :  { %v483_v0 = vpop.f32.mrf.mxu1 }
 0x1c2   :  { %v359_v13 = vmul.f32 %v339_v7, %v310_v4 }
 0x1c3   :  { %v293_v6 = vpop.f32.mrf.mxu1 }
 0x1c4   :  { %v311_v9 = vmax.f32 %v293_v6, 0.0  ;;  %v365_v20 = vadd.f32 %v364_v16, %v359_v13 }
 0x1c5   :  { %v486_v10 = vpop.f32.mrf.mxu1 }
 0x1c6   :  { %v360_v17 = vmul.f32 %v344_v12, %v311_v9 }
 0x1c7   :  { %v298_v14 = vpop.f32.mrf.mxu1 }
 0x1c8   :  { %v312_v15 = vmax.f32 %v298_v14, 0.0  ;;  %v366_v25 = vadd.f32 %v365_v20, %v360_v17 }
 0x1c9   :  { %v489_v18 = vpop.f32.mrf.mxu1 }
 0x1ca   :  { %v361_v21 = vmul.f32 %v349_v19, %v312_v15 }
 0x1cb   :  { %v303_v22 = vpop.f32.mrf.mxu1 }
 0x1cc   :  { %v313_v23 = vmax.f32 %v303_v22, 0.0  ;;  %v367_v28 = vadd.f32 %v366_v25, %v361_v21 }
 0x1cd   :  { %v492_v26 = vpop.f32.mrf.mxu1 }
 0x1ce   :  { %v362_v27 = vmul.f32 %v354_v24, %v313_v23 }
 0x1d0   :  { %v369_v29 = vsel %vm368_vm4, %v362_v27, 0.0 }
 0x1d1   :  { %v370_v30 = vadd.f32 %v369_v29, %v367_v28 }
 0x1d3   :  { %v371_v31 = vrot.slane %v370_v30, 4 }
 0x1d5   :  { %v372_v32 = vadd.f32 %v371_v31, %v370_v30 }
 0x1d7   :  { %v373_v33 = vrot.slane %v372_v32, 2 }
 0x1d9   :  { %v374_v34 = vadd.f32 %v373_v33, %v372_v32 }
 0x1db   :  { %v375_v35 = vrot.slane %v374_v34, 1 }
 0x1dd   :  { %v376_v36 = vadd.f32 %v375_v35, %v374_v34 }
 0x1df   :  { %377 = vst [vmem:[%s693_s4] sm:$0x1] %v376_v36 }

</bundles_post_ra>
